<compile_context>
chip_gen: v6e
topology: v6e:2x2x1
jax: 0.10.0
libtpu: 0.0.40
codegen_flags: <defaults>
</compile_context>

<pallas_src>
import jax
import jax.numpy as jnp
from jax.experimental import pallas as pl
from jax.experimental.pallas import tpu as pltpu


IN_FEATURES = 7
HIDDEN = 10
OUT_FEATURES = 4
GROUP = 8                  # maze states packed per row (batch packing factor)
GRAN = GROUP * 8           # batch-tile granularity: 8 sublanes of packed rows


def neuronet_kernel(x_ref, w1_ref, b1_ref, w2_ref, b2_ref, out_ref):
    # x_ref : (TR, GROUP*7)        packed activations, batch-major
    # w1_ref: (GROUP*7, GROUP*10)  block-diagonal fc1 weights (W1^T blocks)
    # b1_ref: (1, GROUP*10)
    # w2_ref: (GROUP*10, GROUP*4)  block-diagonal fc2 weights (W2^T blocks)
    # b2_ref: (1, GROUP*4)
    # out_ref:(TR, GROUP*4)
    x = x_ref[...].astype(jnp.float32)
    h = jnp.tanh(
        jnp.dot(x, w1_ref[...], preferred_element_type=jnp.float32) + b1_ref[...]
    )
    y = jnp.dot(h, w2_ref[...], preferred_element_type=jnp.float32) + b2_ref[...]
    out_ref[...] = y.astype(out_ref.dtype)


def prepare_params(w1, b1, w2, b2):
    """Hoisted once per model: torch Linear params -> packed kernel layout."""
    w1 = jnp.asarray(w1, jnp.float32)          # (10, 7)
    b1 = jnp.asarray(b1, jnp.float32)          # (10,)
    w2 = jnp.asarray(w2, jnp.float32)          # (4, 10)
    b2 = jnp.asarray(b2, jnp.float32)          # (4,)
    eye = jnp.eye(GROUP, dtype=jnp.float32)
    w1b = jnp.kron(eye, w1.T)                  # (56, 80) block-diagonal
    w2b = jnp.kron(eye, w2.T)                  # (80, 32) block-diagonal
    b1b = jnp.tile(b1, GROUP).reshape(1, -1)   # (1, 80)
    b2b = jnp.tile(b2, GROUP).reshape(1, -1)   # (1, 32)
    return w1b, b1b, w2b, b2b


def _choose_tile(batch, block_b):
    """Batch tile: multiple of GRAN, capped so the grid has >=2 tiles when
    the batch allows it (keeps both v7x TensorCores busy)."""
    tb = max(GRAN, (min(block_b, max(batch, GRAN)) // GRAN) * GRAN)
    if batch >= 2 * GRAN:
        half = -(-batch // (2 * GRAN)) * GRAN   # ceil(batch/2) rounded up to GRAN
        tb = min(tb, half)
    return tb


def neuronet_forward(x, params, *, block_b=32768):
    """x: (B, 7) torch-layout activations -> (B, 4) logits."""
    w1b, b1b, w2b, b2b = params
    B, F = x.shape
    assert F == IN_FEATURES, x.shape

    tb = _choose_tile(B, block_b)
    Bp = -(-B // tb) * tb                       # padded batch, multiple of tb
    if Bp != B:
        # TODO(synk): a remainder kernel call would avoid this copy for huge
        # non-aligned batches; padding is cheap relative to the win from big tiles.
        x = jnp.pad(x, ((0, Bp - B), (0, 0)))
    # FREE contiguous reshape: pack GROUP maze states per row.
    xp = x.reshape(Bp // GROUP, GROUP * IN_FEATURES)

    tr = tb // GROUP                            # packed rows per grid step
    nb = Bp // tb

    out_p = pl.pallas_call(
        neuronet_kernel,
        out_shape=jax.ShapeDtypeStruct((Bp // GROUP, GROUP * OUT_FEATURES), x.dtype),
        grid=(nb,),
        in_specs=[
            # Activations: tiled along packed-row (sublane) axis -> pipelined DMA.
            pl.BlockSpec((tr, GROUP * IN_FEATURES), lambda i: (i, 0)),
            # Weights/biases: constant index_maps -> stay resident in VMEM.
            pl.BlockSpec(w1b.shape, lambda i: (0, 0)),
            pl.BlockSpec(b1b.shape, lambda i: (0, 0)),
            pl.BlockSpec(w2b.shape, lambda i: (0, 0)),
            pl.BlockSpec(b2b.shape, lambda i: (0, 0)),
        ],
        out_specs=pl.BlockSpec((tr, GROUP * OUT_FEATURES), lambda i: (i, 0)),
        compiler_params=pltpu.CompilerParams(
            dimension_semantics=("parallel",),       # shard batch tiles across TCs
            vmem_limit_bytes=32 * 1024 * 1024,       # big tiles; safe on v5e/v6e/v7x
        ),
    )(xp, w1b, b1b, w2b, b2b)

    out = out_p.reshape(Bp, OUT_FEATURES)       # free reshape back to (Bp, 4)
    return out[:B] if Bp != B else out


def init_params(key):
    """Deterministic init mimicking torch.nn.Linear (uniform +/- 1/sqrt(fan_in))."""
    k1, k2, k3, k4 = jax.random.split(key, 4)
    bound1 = 1.0 / jnp.sqrt(7.0)
    bound2 = 1.0 / jnp.sqrt(10.0)
    w1 = jax.random.uniform(k1, (HIDDEN, IN_FEATURES), jnp.float32, -bound1, bound1)
    b1 = jax.random.uniform(k2, (HIDDEN,), jnp.float32, -bound1, bound1)
    w2 = jax.random.uniform(k3, (OUT_FEATURES, HIDDEN), jnp.float32, -bound2, bound2)
    b2 = jax.random.uniform(k4, (OUT_FEATURES,), jnp.float32, -bound2, bound2)
    return w1, b1, w2, b2


def reference(x, w1, b1, w2, b2):
    # Pure-JAX reference of the torch forward pass.
    return jnp.tanh(x @ w1.T + b1) @ w2.T + b2


if __name__ == "__main__":
    key = jax.random.PRNGKey(0)
    k_x, k_x2, k_p = jax.random.split(key, 3)

    w1, b1, w2, b2 = init_params(k_p)
    params = prepare_params(w1, b1, w2, b2)

    # Input: 7 features [walls N,E,S,W, dx, dy, normalized steps] -> 4 logits.
    batch = 8
    x = jax.random.uniform(k_x, (batch, IN_FEATURES), jnp.float32, -1.0, 1.0)
    out = jax.block_until_ready(neuronet_forward(x, params))
    ref = reference(x, w1, b1, w2, b2)
    assert out.shape == (batch, OUT_FEATURES)
    assert jnp.allclose(out, ref, atol=1e-5, rtol=1e-5)

    # Multi-tile path: padding + two "parallel" batch tiles (nb=2).
    batch2 = 300
    x2 = jax.random.uniform(k_x2, (batch2, IN_FEATURES), jnp.float32, -1.0, 1.0)
    out2 = jax.block_until_ready(neuronet_forward(x2, params))
    ref2 = reference(x2, w1, b1, w2, b2)
    assert out2.shape == (batch2, OUT_FEATURES)
    assert jnp.allclose(out2, ref2, atol=1e-5, rtol=1e-5)

    print("KERNEL_OK")
</pallas_src>

<mosaic_0001>
module attributes {stable_mosaic.version = 11 : i64} {
  func.func @neuronet_kernel(%arg0: i32, %arg1: memref<8x56xf32, #tpu.memory_space<vmem>>, %arg2: memref<56x80xf32, #tpu.memory_space<vmem>>, %arg3: memref<1x80xf32, #tpu.memory_space<vmem>>, %arg4: memref<80x32xf32, #tpu.memory_space<vmem>>, %arg5: memref<1x32xf32, #tpu.memory_space<vmem>>, %arg6: memref<8x32xf32, #tpu.memory_space<vmem>>) attributes {dimension_semantics = [#tpu.dimension_semantics<parallel>], iteration_bounds = array<i64: 1>, scalar_prefetch = 0 : i64, scratch_operands = 0 : i64, tpu.core_type = #tpu.core_type<tc>, window_params = [{transform_indices = @transform_0, window_bounds = array<i64: 8, 56>}, {pipeline_mode = #tpu.pipeline_mode<synchronous>, transform_indices = @transform_1, window_bounds = array<i64: 56, 80>}, {pipeline_mode = #tpu.pipeline_mode<synchronous>, transform_indices = @transform_2, window_bounds = array<i64: 1, 80>}, {pipeline_mode = #tpu.pipeline_mode<synchronous>, transform_indices = @transform_3, window_bounds = array<i64: 80, 32>}, {pipeline_mode = #tpu.pipeline_mode<synchronous>, transform_indices = @transform_4, window_bounds = array<i64: 1, 32>}, {transform_indices = @transform_5, window_bounds = array<i64: 8, 32>}]} {
    %c0 = arith.constant 0 : index
    %c0_0 = arith.constant 0 : index
    %0 = vector.load %arg1[%c0, %c0_0] : memref<8x56xf32, #tpu.memory_space<vmem>>, vector<8x56xf32>
    %c0_1 = arith.constant 0 : index
    %c0_2 = arith.constant 0 : index
    %1 = vector.load %arg2[%c0_1, %c0_2] : memref<56x80xf32, #tpu.memory_space<vmem>>, vector<56x80xf32>
    %cst = arith.constant dense<0.000000e+00> : vector<8x80xf32>
    %2 = tpu.matmul %0, %1, %cst {dimension_numbers = #tpu.dot_dimension_numbers<[1], [0], [0], [1], [0, 0, 1, 1], [], []>} : vector<8x56xf32>, vector<56x80xf32>, vector<8x80xf32> -> vector<8x80xf32>
    %c0_3 = arith.constant 0 : index
    %c0_4 = arith.constant 0 : index
    %3 = vector.load %arg3[%c0_3, %c0_4] : memref<1x80xf32, #tpu.memory_space<vmem>>, vector<1x80xf32>
    %4 = vector.broadcast %3 : vector<1x80xf32> to vector<8x80xf32>
    %5 = arith.addf %2, %4 : vector<8x80xf32>
    %6 = math.tanh %5 : vector<8x80xf32>
    %c0_5 = arith.constant 0 : index
    %c0_6 = arith.constant 0 : index
    %7 = vector.load %arg4[%c0_5, %c0_6] : memref<80x32xf32, #tpu.memory_space<vmem>>, vector<80x32xf32>
    %cst_7 = arith.constant dense<0.000000e+00> : vector<8x32xf32>
    %8 = tpu.matmul %6, %7, %cst_7 {dimension_numbers = #tpu.dot_dimension_numbers<[1], [0], [0], [1], [0, 0, 1, 1], [], []>} : vector<8x80xf32>, vector<80x32xf32>, vector<8x32xf32> -> vector<8x32xf32>
    %c0_8 = arith.constant 0 : index
    %c0_9 = arith.constant 0 : index
    %9 = vector.load %arg5[%c0_8, %c0_9] : memref<1x32xf32, #tpu.memory_space<vmem>>, vector<1x32xf32>
    %10 = vector.broadcast %9 : vector<1x32xf32> to vector<8x32xf32>
    %11 = arith.addf %8, %10 : vector<8x32xf32>
    %c0_10 = arith.constant 0 : index
    %c0_11 = arith.constant 0 : index
    %12 = vector.load %arg6[%c0_10, %c0_11] : memref<8x32xf32, #tpu.memory_space<vmem>>, vector<8x32xf32>
    tpu.vector_store %arg6[%c0_10, %c0_11], %11 {strides = array<i32>} : memref<8x32xf32, #tpu.memory_space<vmem>>, vector<8x32xf32>,
    return
  }
  func.func @transform_0(%arg0: i32) -> (i32, i32) {
    %c0_i32 = arith.constant 0 : i32
    %c0_i32_0 = arith.constant 0 : i32
    return %arg0, %c0_i32 : i32, i32
  }
  func.func @transform_1(%arg0: i32) -> (i32, i32) {
    %c0_i32 = arith.constant 0 : i32
    %c0_i32_0 = arith.constant 0 : i32
    %c0_i32_1 = arith.constant 0 : i32
    return %c0_i32, %c0_i32_0 : i32, i32
  }
  func.func @transform_2(%arg0: i32) -> (i32, i32) {
    %c0_i32 = arith.constant 0 : i32
    %c0_i32_0 = arith.constant 0 : i32
    %c0_i32_1 = arith.constant 0 : i32
    return %c0_i32, %c0_i32_0 : i32, i32
  }
  func.func @transform_3(%arg0: i32) -> (i32, i32) {
    %c0_i32 = arith.constant 0 : i32
    %c0_i32_0 = arith.constant 0 : i32
    %c0_i32_1 = arith.constant 0 : i32
    return %c0_i32, %c0_i32_0 : i32, i32
  }
  func.func @transform_4(%arg0: i32) -> (i32, i32) {
    %c0_i32 = arith.constant 0 : i32
    %c0_i32_0 = arith.constant 0 : i32
    %c0_i32_1 = arith.constant 0 : i32
    return %c0_i32, %c0_i32_0 : i32, i32
  }
  func.func @transform_5(%arg0: i32) -> (i32, i32) {
    %c0_i32 = arith.constant 0 : i32
    %c0_i32_0 = arith.constant 0 : i32
    return %arg0, %c0_i32 : i32, i32
  }
}

</mosaic_0001>

<bundles_post_ra>
// kernel: tpu_custom_call.1
= control target key start
LH: loop header
LB: loop body
LE: loop exit
PB: predicated region body
PF: predicated region fallthrough
CT: control target
= control target key end

     0   :  { %v308_v1 = vmov 0.0   ;;  %vm309_vm0 = vmmov 0   ;;  %s404_s0 = inlined_call_operand.vmem [shape: f32[8,56], index: 0, kind: input, shape index: {}]   ;;  %s405_s1 = inlined_call_operand.vmem [shape: f32[56,80], index: 1, kind: input, shape index: {}]   ;;  %s406_s2 = inlined_call_operand.vmem [shape: f32[1,80], index: 2, kind: input, shape index: {}]   ;;  %s407_s3 = inlined_call_operand.vmem [shape: f32[80,32], index: 3, kind: input, shape index: {}]   ;;  %s408_s4 = inlined_call_operand.vmem [shape: f32[1,32], index: 4, kind: input, shape index: {}]   ;;  %s409_s5 = inlined_call_operand.hbm [shape: f32[8,32], index: 5, kind: output, shape index: {}]  }
   0x1   :  { %v28_v0 = vld [vmem:[%s405_s1 + $0x30] sm:$0xff]  ;;  %241 = vmatprep.subr.mxu0 %v308_v1  ;;  %v27_v2 = vld [vmem:[%s405_s1 + $0x28] sm:$0xff]  ;;  %255 = vmatprep.mubr.msk.f32.mxu0 %vm309_vm0, %v308_v1  ;;  %v26_v4 = vld [vmem:[%s405_s1 + $0x20] sm:$0xff] }
   0x2   :  { %242 = vmatpush3.msra.mxu0 %v28_v0  ;;  %258 = vmatprep.subr.mxu1 %v308_v1  ;;  %v120_v3 = vld [vmem:[%s407_s3 + $0x48] sm:$0xff] }
   0x3   :  { %243 = vmatprep.subr.mxu0 %v308_v1  ;;  %259 = vmatpush3.msra.mxu1 %v120_v3 }
   0x4   :  { %10 = vsyncpa [#allocation3], 0  ;;  %244 = vmatpush3.msra.mxu0 %v27_v2  ;;  %260 = vmatprep.subr.mxu1 %v308_v1  ;;  %v25_v5 = vld [vmem:[%s405_s1 + $0x18] sm:$0xff]  ;;  %v24_v6 = vld [vmem:[%s405_s1 + $0x10] sm:$0xff]  ;;  %vm36_vm1 = vcmask 457728   ;;  %vm128_vm2 = vcmask 654336  }
   0x5   :  { %245 = vmatprep.subr.mxu0 %v308_v1  ;;  %278 = vmatprep.mubr.msk.f32.mxu1 %vm309_vm0, %v308_v1  ;;  %v23_v7 = vld [vmem:[%s405_s1 + $0x8] sm:$0xff]  ;;  %v22_v8 = vld [vmem:[%s405_s1] sm:$0xff]  ;;  %v118_v11 = vld [vmem:[%s407_s3 + $0x38] sm:$0xff]  ;;  %s310_s6 = smov [#allocation2]   ;;  %vm202_vm3 = vcmask 261120  }
   0x6   :  { %246 = vmatpush3.msra.mxu0 %v26_v4  ;;  %v21_v9 = vld [vmem:[%s404_s0] sm:$0xff]  ;;  %v117_v12 = vld [vmem:[%s407_s3 + $0x30] sm:$0xff]  ;;  %v116_v13 = vld [vmem:[%s407_s3 + $0x28] sm:$0xff] }
   0x7   :  { %247 = vmatprep.subr.mxu0 %v308_v1  ;;  %v119_v10 = vld [vmem:[%s407_s3 + $0x40] sm:$0xff]  ;;  %v114_v15 = vld [vmem:[%s407_s3 + $0x18] sm:$0xff]  ;;  %v113_v16 = vld [vmem:[%s407_s3 + $0x10] sm:$0xff] }
   0x8   :  { %248 = vmatpush3.msra.mxu0 %v25_v5  ;;  %261 = vmatpush3.msra.mxu1 %v119_v10  ;;  %v115_v14 = vld [vmem:[%s407_s3 + $0x20] sm:$0xff]  ;;  %v112_v17 = vld [vmem:[%s407_s3 + $0x8] sm:$0xff] }
   0x9   :  { %249 = vmatprep.subr.mxu0 %v308_v1  ;;  %262 = vmatprep.subr.mxu1 %v308_v1  ;;  %v111_v18 = vld [vmem:[%s407_s3] sm:$0xff]  ;;  %s210_s3 = sshll.u32 %s310_s6, 4  ;;  %s211_s3 = int_to_ptr.vmem [resolvable:$true] %s210_s3 }
   0xa   :  { %250 = vmatpush3.msra.mxu0 %v24_v6  ;;  %263 = vmatpush3.msra.mxu1 %v118_v11  ;;  %v218_v19 = vld [vmem:[%s406_s2] ss:$0 sm:$0xff]  ;;  %s286_s2 = scalar_lea.vmem %s211_s3, 128  ;;  %p291_p1 = scmp.lt.s32.totalorder %s211_s3, %s211_s3 }
   0xb   :  { %251 = vmatprep.subr.mxu0 %v308_v1  ;;  %264 = vmatprep.subr.mxu1 %v308_v1  ;;  %v220_v24 = vld [vmem:[%s408_s4] ss:$0 sm:$0xff]  ;;  %p287_p0 = scmp.ne.s32.totalorder %s211_s3, %s286_s2  ;;  %p292_p2 = scmp.lt.s32.totalorder %s286_s2, %s286_s2 }
   0xc   :  { %252 = vmatpush3.msra.mxu0 %v23_v7  ;;  %265 = vmatpush3.msra.mxu1 %v117_v12 }
   0xd   :  { %253 = vmatprep.subr.mxu0 %v308_v1  ;;  %266 = vmatprep.subr.mxu1 %v308_v1  ;;  %p293_p3 = por %p292_p2, %p291_p1 }
   0xe   :  { %254 = vmatpush3.msra.mxu0 %v22_v8  ;;  %267 = vmatpush3.msra.mxu1 %v116_v13 }
   0xf   :  { %256 = vmatmul.mubr.msk.f32.vlgmr.msra.gmra.mxu0 %vm36_vm1, %v21_v9  ;;  %268 = vmatprep.subr.mxu1 %v308_v1  ;;  %p294_p4 = pnand %p293_p3, %p287_p0 }
  0x10   :  { %269 = vmatpush3.msra.mxu1 %v115_v14 }
  0x11   :  { %270 = vmatprep.subr.mxu1 %v308_v1 }
  0x12   :  { %271 = vmatpush3.msra.mxu1 %v114_v15 }
  0x13   :  { %272 = vmatprep.subr.mxu1 %v308_v1 }
  0x14   :  { %273 = vmatpush3.msra.mxu1 %v113_v16 }
  0x15   :  { %274 = vmatprep.subr.mxu1 %v308_v1 }
  0x16   :  { %275 = vmatpush3.msra.mxu1 %v112_v17 }
  0x17   :  { %276 = vmatprep.subr.mxu1 %v308_v1 }
  0x18   :  { %277 = vmatpush3.msra.mxu1 %v111_v18 }
  0xcf   :  { %v106_v20 = vpop.f32.mrf.mxu0 }
  0xd0   :  { %v107_v21 = vadd.f32 %v218_v19, %v106_v20 }
  0xd1   :  { %v257_v22 = vpop.f32.mrf.mxu0 }
  0xd2   :  { %284 = vtanh.f32 %v107_v21 }
  0xdf   :  { %v285_v23 = vpop.eup %284 }
  0xe0   :  { %279 = vmatmul.mubr.msk.f32.vlgmr.msra.gmra.mxu1 %vm128_vm2, %v285_v23 }
 0x1a0   :  { %v198_v25 = vpop.f32.mrf.mxu1 }
 0x1a1   :  { %v199_v26 = vadd.f32 %v220_v24, %v198_v25 }
 0x1a2   :  { %v280_v27 = vpop.f32.mrf.mxu1 }
 0x1a3   :  { %203 = vst.msk [vmem:[#allocation2] sm:$0xff] %vm202_vm3, %v199_v26 }
 0x1a4   :  { %297 = shalt.err (!%p294_p4)
}
 0x1a5   :  { %213 = dma.vmem_to_hbm [thread:$0]  %s211_s3, 128, %s409_s5, [#allocation3]  }
 0x1a6   :  { %306 = dma.done.wait [#allocation3], 128  }
 0x1a7   :  { %307 = vsyncadd [#allocation3], 4294967168 }
 0x1a8   :  { %217 = vsyncpa [#allocation3], 1 }

</bundles_post_ra>
